<compile_context>
chip_gen: v5e
topology: v5e:2x2
jax: 0.10.0
libtpu: 0.0.40
codegen_flags: <defaults>
</compile_context>

<pallas_src>
import functools

import jax
import jax.numpy as jnp
from jax import lax
from jax.experimental import pallas as pl
from jax.experimental.pallas import tpu as pltpu


# ------------------------------ Pallas kernel -------------------------------

def _stem_kernel(p1_ref, mask_ref, w1_ref, b1_ref, w2_ref, b2_ref, w3_ref,
                 b3_ref, w4l_ref, w4r_ref, b4_ref, out_ref, *, ncols):
    """Whole StemBlock for one image on a flattened (H/4+1, W/4+1) grid.

    p1_ref   : (1, M, 108) bf16/f32  input patches, 27 taps x 4 output phases
    mask_ref : (M, 1)      f32       1.0 on real positions, 0.0 on the pad ring
    w1_ref   : (4, 108, 32)          per-phase folded conv1 weight (zero-padded)
    w2_ref   : (32, 16)              folded 1x1-left weight
    w3_ref   : (3, 3, 16, 32)        folded 3x3-left weight, [kh, kw, cin, cout]
    w4l/w4r  : (32, 32)              folded final 1x1 weight split (left/right)
    ncols    : W/4 + 1               row length of the flattened padded grid
    """
    cdt = w2_ref.dtype                      # MXU operand dtype (bf16 or f32)
    p1 = p1_ref[0]                          # (M, 108)
    mask = mask_ref[...]                    # (M, 1)
    m_rows = p1.shape[0]

    # ---- conv_3x3_first + BN + ReLU: one matmul per 2x2 output phase --------
    b1 = b1_ref[...]
    out_first = []                          # four (M, 32) f32, phase g = 2*hp+wp
    for g in range(4):
        acc = jnp.dot(p1, w1_ref[g], preferred_element_type=jnp.float32)
        out_first.append(jnp.maximum(acc + b1, 0.0))

    # ---- right branch: MaxPool2d(2,2) == elementwise max over the 4 phases --
    out_right = jnp.maximum(jnp.maximum(out_first[0], out_first[1]),
                            jnp.maximum(out_first[2], out_first[3]))

    # ---- left branch 1x1 + BN + ReLU (per phase). `mask` zeroes the pad ring
    # so the following 3x3 conv sees genuine zero padding. ---------------------
    w2 = w2_ref[...]
    b2 = b2_ref[...]
    out_left1 = []
    for g in range(4):
        acc = jnp.dot(out_first[g].astype(cdt), w2,
                      preferred_element_type=jnp.float32)
        out_left1.append((jnp.maximum(acc + b2, 0.0) * mask).astype(cdt))

    # ---- left branch 3x3 stride-2 + BN + ReLU --------------------------------
    # Each of the 9 taps is one matmul on the right phase plane plus a static
    # zero-fill row shift on the flattened padded grid.
    acc3 = jnp.zeros((m_rows, 32), jnp.float32)
    for kh in range(3):
        hp = 1 if kh == 0 else kh - 1
        row_off = ncols if kh == 0 else 0
        for kw in range(3):
            wp = 1 if kw == 0 else kw - 1
            off = row_off + (1 if kw == 0 else 0)
            g = 2 * hp + wp
            contrib = jnp.dot(out_left1[g], w3_ref[kh, kw],
                              preferred_element_type=jnp.float32)
            if off:
                contrib = jnp.concatenate(
                    [jnp.zeros((off, 32), jnp.float32),
                     contrib[:m_rows - off]], axis=0)
            acc3 = acc3 + contrib
    out_left = jnp.maximum(acc3 + b3_ref[...], 0.0)

    # ---- concat + final 1x1 + BN + ReLU (concat folded into two matmuls) ----
    last = (jnp.dot(out_left.astype(cdt), w4l_ref[...],
                    preferred_element_type=jnp.float32)
            + jnp.dot(out_right.astype(cdt), w4r_ref[...],
                      preferred_element_type=jnp.float32)
            + b4_ref[...])
    out_ref[0] = jnp.maximum(last, 0.0).astype(out_ref.dtype)


# ------------------------------ JAX wrapper ----------------------------------

def _fold_bn(w_oihw, gamma, beta, mean, var, eps=1e-5):
    """Fold BN running stats into the conv: (KH*KW*Cin, Cout) weight + bias."""
    scale = gamma / jnp.sqrt(var + eps)
    cout, cin, kh, kw = w_oihw.shape
    w_mat = jnp.transpose(w_oihw, (2, 3, 1, 0)).reshape(kh * kw * cin, cout)
    return w_mat * scale[None, :], (beta - mean * scale)


@functools.partial(jax.jit, static_argnames=("compute_dtype",))
def stem_block_forward(params, x_nchw, compute_dtype=jnp.bfloat16):
    n, cin, h, w = x_nchw.shape
    assert cin == 3 and h % 4 == 0 and w % 4 == 0, "expects Cin=3, H,W % 4 == 0"
    ho, wo = h // 4, w // 4                      # final spatial size
    m = (ho + 1) * (wo + 1)                      # flattened padded grid
    f32 = jnp.float32

    # --- prepare input patches, gathered per 2x2 output phase (space-to-depth)
    x = jnp.transpose(x_nchw, (0, 2, 3, 1)).astype(f32)       # NHWC
    xp = jnp.pad(x, ((0, 0), (1, 1), (1, 1), (0, 0)))         # conv1 pad = 1
    taps = []
    for hp in (0, 1):
        for wp in (0, 1):
            for kh in range(3):
                for kw in range(3):
                    rs, cs = 2 * hp + kh, 2 * wp + kw
                    taps.append(xp[:, rs:rs + 4 * (ho - 1) + 1:4,
                                   cs:cs + 4 * (wo - 1) + 1:4, :])
    p1 = jnp.concatenate(taps, axis=-1)                       # (N, ho, wo, 108)
    p1 = jnp.pad(p1, ((0, 0), (1, 0), (1, 0), (0, 0)))        # zero ring
    p1 = p1.reshape(n, m, 108).astype(compute_dtype)

    mask = jnp.pad(jnp.ones((ho, wo, 1), f32),
                   ((1, 0), (1, 0), (0, 0))).reshape(m, 1)

    # --- fold BN into the four convs ---------------------------------------
    w1m, b1 = _fold_bn(**params["conv_3x3_first"])            # (27, 32)
    w2m, b2 = _fold_bn(**params["conv_1x1_left"])             # (32, 16)
    w3m, b3 = _fold_bn(**params["conv_3x3_left"])             # (144, 32)
    w4m, b4 = _fold_bn(**params["conv_1x1_last"])             # (64, 32)

    w1s = jnp.zeros((4, 108, 32), f32)
    for g in range(4):
        w1s = w1s.at[g, g * 27:(g + 1) * 27, :].set(w1m)
    w1s = w1s.astype(compute_dtype)
    w2c = w2m.astype(compute_dtype)
    w3s = w3m.reshape(3, 3, 16, 32).astype(compute_dtype)
    w4l = w4m[:32].astype(compute_dtype)                      # out_left half
    w4r = w4m[32:].astype(compute_dtype)                      # out_right half
    b1r, b2r = b1.reshape(1, 32).astype(f32), b2.reshape(1, 16).astype(f32)
    b3r, b4r = b3.reshape(1, 32).astype(f32), b4.reshape(1, 32).astype(f32)

    out = pl.pallas_call(
        functools.partial(_stem_kernel, ncols=wo + 1),
        out_shape=jax.ShapeDtypeStruct((n, m, 32), f32),
        grid=(n,),
        in_specs=[
            pl.BlockSpec((1, m, 108), lambda i: (i, 0, 0)),        # p1
            pl.BlockSpec((m, 1), lambda i: (0, 0)),                # mask
            pl.BlockSpec((4, 108, 32), lambda i: (0, 0, 0)),       # w1s
            pl.BlockSpec((1, 32), lambda i: (0, 0)),               # b1
            pl.BlockSpec((32, 16), lambda i: (0, 0)),              # w2
            pl.BlockSpec((1, 16), lambda i: (0, 0)),               # b2
            pl.BlockSpec((3, 3, 16, 32), lambda i: (0, 0, 0, 0)),  # w3
            pl.BlockSpec((1, 32), lambda i: (0, 0)),               # b3
            pl.BlockSpec((32, 32), lambda i: (0, 0)),              # w4 left
            pl.BlockSpec((32, 32), lambda i: (0, 0)),              # w4 right
            pl.BlockSpec((1, 32), lambda i: (0, 0)),               # b4
        ],
        out_specs=pl.BlockSpec((1, m, 32), lambda i: (i, 0, 0)),
        compiler_params=pltpu.CompilerParams(
            dimension_semantics=("parallel",)),
    )(p1, mask, w1s, b1r, w2c, b2r, w3s, b3r, w4l, w4r, b4r)

    out = out.reshape(n, ho + 1, wo + 1, 32)[:, 1:, 1:, :]     # drop pad ring
    return jnp.transpose(out, (0, 3, 1, 2))                    # back to NCHW


# ------------------------- params + pure-JAX reference -----------------------

def init_params(key):
    def conv_bn(k, cin, cout, ksz):
        kw_, kg, kb, km, kv = jax.random.split(k, 5)
        return dict(
            w_oihw=jax.random.normal(kw_, (cout, cin, ksz, ksz), jnp.float32) * 0.1,
            gamma=jax.random.uniform(kg, (cout,), jnp.float32, 0.5, 1.5),
            beta=jax.random.normal(kb, (cout,), jnp.float32) * 0.1,
            mean=jax.random.normal(km, (cout,), jnp.float32) * 0.1,
            var=jax.random.uniform(kv, (cout,), jnp.float32, 0.5, 1.5),
        )
    k0, k1, k2, k3 = jax.random.split(key, 4)
    return dict(
        conv_3x3_first=conv_bn(k0, 3, 32, 3),
        conv_1x1_left=conv_bn(k1, 32, 16, 1),
        conv_3x3_left=conv_bn(k2, 16, 32, 3),
        conv_1x1_last=conv_bn(k3, 64, 32, 1),
    )


def _ref_conv_bn_relu(x_nchw, p, stride, padding):
    out = lax.conv_general_dilated(
        x_nchw, p["w_oihw"], (stride, stride), [(padding, padding)] * 2,
        dimension_numbers=("NCHW", "OIHW", "NCHW"))
    scale = p["gamma"] / jnp.sqrt(p["var"] + 1e-5)
    bias = p["beta"] - p["mean"] * scale
    return jnp.maximum(out * scale[None, :, None, None]
                       + bias[None, :, None, None], 0.0)


def ref_forward(params, x):
    out_first = _ref_conv_bn_relu(x, params["conv_3x3_first"], 2, 1)
    out_left = _ref_conv_bn_relu(out_first, params["conv_1x1_left"], 1, 0)
    out_left = _ref_conv_bn_relu(out_left, params["conv_3x3_left"], 2, 1)
    out_right = lax.reduce_window(out_first, -jnp.inf, lax.max,
                                  (1, 1, 2, 2), (1, 1, 2, 2), "VALID")
    out_middle = jnp.concatenate([out_left, out_right], axis=1)
    return _ref_conv_bn_relu(out_middle, params["conv_1x1_last"], 1, 0)


# ----------------------------------- main ------------------------------------

if __name__ == "__main__":
    key = jax.random.PRNGKey(0)
    kx, kp = jax.random.split(key)
    x = jax.random.normal(kx, (2, 3, 16, 16), jnp.float32)   # NCHW like torch
    params = init_params(kp)

    ref = jax.block_until_ready(ref_forward(params, x))

    # f32 operands: tight numerical check of the fused kernel's structure.
    out_f32 = jax.block_until_ready(
        stem_block_forward(params, x, compute_dtype=jnp.float32))
    assert out_f32.shape == (2, 32, 4, 4), out_f32.shape
    err = float(jnp.max(jnp.abs(out_f32 - ref)))
    assert err < 1e-4, err

    # bf16 MXU operands (default perf path): loose check.
    out_bf16 = jax.block_until_ready(stem_block_forward(params, x))
    assert out_bf16.shape == (2, 32, 4, 4), out_bf16.shape
    err16 = float(jnp.max(jnp.abs(out_bf16 - ref)))
    assert err16 < 1e-1, err16

    print("KERNEL_OK")
</pallas_src>

<mosaic_0001>
module attributes {stable_mosaic.version = 11 : i64} {
  func.func @_stem_kernel(%arg0: i32, %arg1: memref<1x25x108xf32, #tpu.memory_space<vmem>>, %arg2: memref<25x1xf32, #tpu.memory_space<vmem>>, %arg3: memref<4x108x32xf32, #tpu.memory_space<vmem>>, %arg4: memref<1x32xf32, #tpu.memory_space<vmem>>, %arg5: memref<32x16xf32, #tpu.memory_space<vmem>>, %arg6: memref<1x16xf32, #tpu.memory_space<vmem>>, %arg7: memref<3x3x16x32xf32, #tpu.memory_space<vmem>>, %arg8: memref<1x32xf32, #tpu.memory_space<vmem>>, %arg9: memref<32x32xf32, #tpu.memory_space<vmem>>, %arg10: memref<32x32xf32, #tpu.memory_space<vmem>>, %arg11: memref<1x32xf32, #tpu.memory_space<vmem>>, %arg12: memref<1x25x32xf32, #tpu.memory_space<vmem>>) attributes {dimension_semantics = [#tpu.dimension_semantics<parallel>], iteration_bounds = array<i64: 2>, scalar_prefetch = 0 : i64, scratch_operands = 0 : i64, tpu.core_type = #tpu.core_type<tc>, window_params = [{transform_indices = @transform_0, window_bounds = array<i64: 1, 25, 108>}, {pipeline_mode = #tpu.pipeline_mode<synchronous>, transform_indices = @transform_1, window_bounds = array<i64: 25, 1>}, {pipeline_mode = #tpu.pipeline_mode<synchronous>, transform_indices = @transform_2, window_bounds = array<i64: 4, 108, 32>}, {pipeline_mode = #tpu.pipeline_mode<synchronous>, transform_indices = @transform_3, window_bounds = array<i64: 1, 32>}, {pipeline_mode = #tpu.pipeline_mode<synchronous>, transform_indices = @transform_4, window_bounds = array<i64: 32, 16>}, {pipeline_mode = #tpu.pipeline_mode<synchronous>, transform_indices = @transform_5, window_bounds = array<i64: 1, 16>}, {pipeline_mode = #tpu.pipeline_mode<synchronous>, transform_indices = @transform_6, window_bounds = array<i64: 3, 3, 16, 32>}, {pipeline_mode = #tpu.pipeline_mode<synchronous>, transform_indices = @transform_7, window_bounds = array<i64: 1, 32>}, {pipeline_mode = #tpu.pipeline_mode<synchronous>, transform_indices = @transform_8, window_bounds = array<i64: 32, 32>}, {pipeline_mode = #tpu.pipeline_mode<synchronous>, transform_indices = @transform_9, window_bounds = array<i64: 32, 32>}, {pipeline_mode = #tpu.pipeline_mode<synchronous>, transform_indices = @transform_10, window_bounds = array<i64: 1, 32>}, {transform_indices = @transform_11, window_bounds = array<i64: 1, 25, 32>}]} {
    %c0 = arith.constant 0 : index
    %c0_0 = arith.constant 0 : index
    %c0_1 = arith.constant 0 : index
    %0 = vector.load %arg1[%c0, %c0_0, %c0_1] : memref<1x25x108xf32, #tpu.memory_space<vmem>>, vector<1x25x108xf32>
    %1 = vector.shape_cast %0 : vector<1x25x108xf32> to vector<25x108xf32>
    %c0_2 = arith.constant 0 : index
    %c0_3 = arith.constant 0 : index
    %2 = vector.load %arg2[%c0_2, %c0_3] : memref<25x1xf32, #tpu.memory_space<vmem>>, vector<25x1xf32>
    %c0_4 = arith.constant 0 : index
    %c0_5 = arith.constant 0 : index
    %3 = vector.load %arg4[%c0_4, %c0_5] : memref<1x32xf32, #tpu.memory_space<vmem>>, vector<1x32xf32>
    %c0_6 = arith.constant 0 : index
    %c0_7 = arith.constant 0 : index
    %c0_8 = arith.constant 0 : index
    %4 = vector.load %arg3[%c0_6, %c0_7, %c0_8] : memref<4x108x32xf32, #tpu.memory_space<vmem>>, vector<1x108x32xf32>
    %5 = vector.shape_cast %4 : vector<1x108x32xf32> to vector<108x32xf32>
    %cst = arith.constant dense<0.000000e+00> : vector<25x32xf32>
    %6 = tpu.matmul %1, %5, %cst {dimension_numbers = #tpu.dot_dimension_numbers<[1], [0], [0], [1], [0, 0, 1, 1], [], []>} : vector<25x108xf32>, vector<108x32xf32>, vector<25x32xf32> -> vector<25x32xf32>
    %7 = vector.broadcast %3 : vector<1x32xf32> to vector<25x32xf32>
    %8 = arith.addf %6, %7 : vector<25x32xf32>
    %cst_9 = arith.constant 0.000000e+00 : f32
    %9 = vector.broadcast %cst_9 : f32 to vector<25x32xf32>
    %10 = arith.maximumf %8, %9 : vector<25x32xf32>
    %c1 = arith.constant 1 : index
    %c0_10 = arith.constant 0 : index
    %c0_11 = arith.constant 0 : index
    %11 = vector.load %arg3[%c1, %c0_10, %c0_11] : memref<4x108x32xf32, #tpu.memory_space<vmem>>, vector<1x108x32xf32>
    %12 = vector.shape_cast %11 : vector<1x108x32xf32> to vector<108x32xf32>
    %cst_12 = arith.constant dense<0.000000e+00> : vector<25x32xf32>
    %13 = tpu.matmul %1, %12, %cst_12 {dimension_numbers = #tpu.dot_dimension_numbers<[1], [0], [0], [1], [0, 0, 1, 1], [], []>} : vector<25x108xf32>, vector<108x32xf32>, vector<25x32xf32> -> vector<25x32xf32>
    %14 = vector.broadcast %3 : vector<1x32xf32> to vector<25x32xf32>
    %15 = arith.addf %13, %14 : vector<25x32xf32>
    %cst_13 = arith.constant 0.000000e+00 : f32
    %16 = vector.broadcast %cst_13 : f32 to vector<25x32xf32>
    %17 = arith.maximumf %15, %16 : vector<25x32xf32>
    %c2 = arith.constant 2 : index
    %c0_14 = arith.constant 0 : index
    %c0_15 = arith.constant 0 : index
    %18 = vector.load %arg3[%c2, %c0_14, %c0_15] : memref<4x108x32xf32, #tpu.memory_space<vmem>>, vector<1x108x32xf32>
    %19 = vector.shape_cast %18 : vector<1x108x32xf32> to vector<108x32xf32>
    %cst_16 = arith.constant dense<0.000000e+00> : vector<25x32xf32>
    %20 = tpu.matmul %1, %19, %cst_16 {dimension_numbers = #tpu.dot_dimension_numbers<[1], [0], [0], [1], [0, 0, 1, 1], [], []>} : vector<25x108xf32>, vector<108x32xf32>, vector<25x32xf32> -> vector<25x32xf32>
    %21 = vector.broadcast %3 : vector<1x32xf32> to vector<25x32xf32>
    %22 = arith.addf %20, %21 : vector<25x32xf32>
    %cst_17 = arith.constant 0.000000e+00 : f32
    %23 = vector.broadcast %cst_17 : f32 to vector<25x32xf32>
    %24 = arith.maximumf %22, %23 : vector<25x32xf32>
    %c3 = arith.constant 3 : index
    %c0_18 = arith.constant 0 : index
    %c0_19 = arith.constant 0 : index
    %25 = vector.load %arg3[%c3, %c0_18, %c0_19] : memref<4x108x32xf32, #tpu.memory_space<vmem>>, vector<1x108x32xf32>
    %26 = vector.shape_cast %25 : vector<1x108x32xf32> to vector<108x32xf32>
    %cst_20 = arith.constant dense<0.000000e+00> : vector<25x32xf32>
    %27 = tpu.matmul %1, %26, %cst_20 {dimension_numbers = #tpu.dot_dimension_numbers<[1], [0], [0], [1], [0, 0, 1, 1], [], []>} : vector<25x108xf32>, vector<108x32xf32>, vector<25x32xf32> -> vector<25x32xf32>
    %28 = vector.broadcast %3 : vector<1x32xf32> to vector<25x32xf32>
    %29 = arith.addf %27, %28 : vector<25x32xf32>
    %cst_21 = arith.constant 0.000000e+00 : f32
    %30 = vector.broadcast %cst_21 : f32 to vector<25x32xf32>
    %31 = arith.maximumf %29, %30 : vector<25x32xf32>
    %32 = arith.maximumf %10, %17 : vector<25x32xf32>
    %33 = arith.maximumf %24, %31 : vector<25x32xf32>
    %34 = arith.maximumf %32, %33 : vector<25x32xf32>
    %c0_22 = arith.constant 0 : index
    %c0_23 = arith.constant 0 : index
    %35 = vector.load %arg5[%c0_22, %c0_23] : memref<32x16xf32, #tpu.memory_space<vmem>>, vector<32x16xf32>
    %c0_24 = arith.constant 0 : index
    %c0_25 = arith.constant 0 : index
    %36 = vector.load %arg6[%c0_24, %c0_25] : memref<1x16xf32, #tpu.memory_space<vmem>>, vector<1x16xf32>
    %cst_26 = arith.constant dense<0.000000e+00> : vector<25x16xf32>
    %37 = tpu.matmul %10, %35, %cst_26 {dimension_numbers = #tpu.dot_dimension_numbers<[1], [0], [0], [1], [0, 0, 1, 1], [], []>} : vector<25x32xf32>, vector<32x16xf32>, vector<25x16xf32> -> vector<25x16xf32>
    %38 = vector.broadcast %36 : vector<1x16xf32> to vector<25x16xf32>
    %39 = arith.addf %37, %38 : vector<25x16xf32>
    %cst_27 = arith.constant 0.000000e+00 : f32
    %40 = vector.broadcast %cst_27 : f32 to vector<25x16xf32>
    %41 = arith.maximumf %39, %40 : vector<25x16xf32>
    %42 = vector.broadcast %2 : vector<25x1xf32> to vector<25x16xf32>
    %43 = arith.mulf %41, %42 : vector<25x16xf32>
    %cst_28 = arith.constant dense<0.000000e+00> : vector<25x16xf32>
    %44 = tpu.matmul %17, %35, %cst_28 {dimension_numbers = #tpu.dot_dimension_numbers<[1], [0], [0], [1], [0, 0, 1, 1], [], []>} : vector<25x32xf32>, vector<32x16xf32>, vector<25x16xf32> -> vector<25x16xf32>
    %45 = vector.broadcast %36 : vector<1x16xf32> to vector<25x16xf32>
    %46 = arith.addf %44, %45 : vector<25x16xf32>
    %cst_29 = arith.constant 0.000000e+00 : f32
    %47 = vector.broadcast %cst_29 : f32 to vector<25x16xf32>
    %48 = arith.maximumf %46, %47 : vector<25x16xf32>
    %49 = vector.broadcast %2 : vector<25x1xf32> to vector<25x16xf32>
    %50 = arith.mulf %48, %49 : vector<25x16xf32>
    %cst_30 = arith.constant dense<0.000000e+00> : vector<25x16xf32>
    %51 = tpu.matmul %24, %35, %cst_30 {dimension_numbers = #tpu.dot_dimension_numbers<[1], [0], [0], [1], [0, 0, 1, 1], [], []>} : vector<25x32xf32>, vector<32x16xf32>, vector<25x16xf32> -> vector<25x16xf32>
    %52 = vector.broadcast %36 : vector<1x16xf32> to vector<25x16xf32>
    %53 = arith.addf %51, %52 : vector<25x16xf32>
    %cst_31 = arith.constant 0.000000e+00 : f32
    %54 = vector.broadcast %cst_31 : f32 to vector<25x16xf32>
    %55 = arith.maximumf %53, %54 : vector<25x16xf32>
    %56 = vector.broadcast %2 : vector<25x1xf32> to vector<25x16xf32>
    %57 = arith.mulf %55, %56 : vector<25x16xf32>
    %cst_32 = arith.constant dense<0.000000e+00> : vector<25x16xf32>
    %58 = tpu.matmul %31, %35, %cst_32 {dimension_numbers = #tpu.dot_dimension_numbers<[1], [0], [0], [1], [0, 0, 1, 1], [], []>} : vector<25x32xf32>, vector<32x16xf32>, vector<25x16xf32> -> vector<25x16xf32>
    %59 = vector.broadcast %36 : vector<1x16xf32> to vector<25x16xf32>
    %60 = arith.addf %58, %59 : vector<25x16xf32>
    %cst_33 = arith.constant 0.000000e+00 : f32
    %61 = vector.broadcast %cst_33 : f32 to vector<25x16xf32>
    %62 = arith.maximumf %60, %61 : vector<25x16xf32>
    %63 = vector.broadcast %2 : vector<25x1xf32> to vector<25x16xf32>
    %64 = arith.mulf %62, %63 : vector<25x16xf32>
    %cst_34 = arith.constant 0.000000e+00 : f32
    %65 = vector.broadcast %cst_34 : f32 to vector<25x32xf32>
    %c0_35 = arith.constant 0 : index
    %c0_36 = arith.constant 0 : index
    %c0_37 = arith.constant 0 : index
    %c0_38 = arith.constant 0 : index
    %66 = vector.load %arg7[%c0_35, %c0_36, %c0_37, %c0_38] : memref<3x3x16x32xf32, #tpu.memory_space<vmem>>, vector<1x1x16x32xf32>
    %67 = vector.shape_cast %66 : vector<1x1x16x32xf32> to vector<16x32xf32>
    %cst_39 = arith.constant dense<0.000000e+00> : vector<25x32xf32>
    %68 = tpu.matmul %64, %67, %cst_39 {dimension_numbers = #tpu.dot_dimension_numbers<[1], [0], [0], [1], [0, 0, 1, 1], [], []>} : vector<25x16xf32>, vector<16x32xf32>, vector<25x32xf32> -> vector<25x32xf32>
    %cst_40 = arith.constant 0.000000e+00 : f32
    %69 = vector.broadcast %cst_40 : f32 to vector<6x32xf32>
    %70 = vector.extract_strided_slice %68 {offsets = [0, 0], sizes = [19, 32], strides = [1, 1]} : vector<25x32xf32> to vector<19x32xf32>
    %71 = tpu.concatenate %69, %70 in 0 : vector<6x32xf32>, vector<19x32xf32> -> vector<25x32xf32>
    %72 = arith.addf %65, %71 : vector<25x32xf32>
    %c0_41 = arith.constant 0 : index
    %c1_42 = arith.constant 1 : index
    %c0_43 = arith.constant 0 : index
    %c0_44 = arith.constant 0 : index
    %73 = vector.load %arg7[%c0_41, %c1_42, %c0_43, %c0_44] : memref<3x3x16x32xf32, #tpu.memory_space<vmem>>, vector<1x1x16x32xf32>
    %74 = vector.shape_cast %73 : vector<1x1x16x32xf32> to vector<16x32xf32>
    %cst_45 = arith.constant dense<0.000000e+00> : vector<25x32xf32>
    %75 = tpu.matmul %57, %74, %cst_45 {dimension_numbers = #tpu.dot_dimension_numbers<[1], [0], [0], [1], [0, 0, 1, 1], [], []>} : vector<25x16xf32>, vector<16x32xf32>, vector<25x32xf32> -> vector<25x32xf32>
    %cst_46 = arith.constant 0.000000e+00 : f32
    %76 = vector.broadcast %cst_46 : f32 to vector<5x32xf32>
    %77 = vector.extract_strided_slice %75 {offsets = [0, 0], sizes = [20, 32], strides = [1, 1]} : vector<25x32xf32> to vector<20x32xf32>
    %78 = tpu.concatenate %76, %77 in 0 : vector<5x32xf32>, vector<20x32xf32> -> vector<25x32xf32>
    %79 = arith.addf %72, %78 : vector<25x32xf32>
    %c0_47 = arith.constant 0 : index
    %c2_48 = arith.constant 2 : index
    %c0_49 = arith.constant 0 : index
    %c0_50 = arith.constant 0 : index
    %80 = vector.load %arg7[%c0_47, %c2_48, %c0_49, %c0_50] : memref<3x3x16x32xf32, #tpu.memory_space<vmem>>, vector<1x1x16x32xf32>
    %81 = vector.shape_cast %80 : vector<1x1x16x32xf32> to vector<16x32xf32>
    %cst_51 = arith.constant dense<0.000000e+00> : vector<25x32xf32>
    %82 = tpu.matmul %64, %81, %cst_51 {dimension_numbers = #tpu.dot_dimension_numbers<[1], [0], [0], [1], [0, 0, 1, 1], [], []>} : vector<25x16xf32>, vector<16x32xf32>, vector<25x32xf32> -> vector<25x32xf32>
    %cst_52 = arith.constant 0.000000e+00 : f32
    %83 = vector.broadcast %cst_52 : f32 to vector<5x32xf32>
    %84 = vector.extract_strided_slice %82 {offsets = [0, 0], sizes = [20, 32], strides = [1, 1]} : vector<25x32xf32> to vector<20x32xf32>
    %85 = tpu.concatenate %83, %84 in 0 : vector<5x32xf32>, vector<20x32xf32> -> vector<25x32xf32>
    %86 = arith.addf %79, %85 : vector<25x32xf32>
    %c1_53 = arith.constant 1 : index
    %c0_54 = arith.constant 0 : index
    %c0_55 = arith.constant 0 : index
    %c0_56 = arith.constant 0 : index
    %87 = vector.load %arg7[%c1_53, %c0_54, %c0_55, %c0_56] : memref<3x3x16x32xf32, #tpu.memory_space<vmem>>, vector<1x1x16x32xf32>
    %88 = vector.shape_cast %87 : vector<1x1x16x32xf32> to vector<16x32xf32>
    %cst_57 = arith.constant dense<0.000000e+00> : vector<25x32xf32>
    %89 = tpu.matmul %50, %88, %cst_57 {dimension_numbers = #tpu.dot_dimension_numbers<[1], [0], [0], [1], [0, 0, 1, 1], [], []>} : vector<25x16xf32>, vector<16x32xf32>, vector<25x32xf32> -> vector<25x32xf32>
    %cst_58 = arith.constant 0.000000e+00 : f32
    %90 = vector.broadcast %cst_58 : f32 to vector<1x32xf32>
    %91 = vector.extract_strided_slice %89 {offsets = [0, 0], sizes = [24, 32], strides = [1, 1]} : vector<25x32xf32> to vector<24x32xf32>
    %92 = tpu.concatenate %90, %91 in 0 : vector<1x32xf32>, vector<24x32xf32> -> vector<25x32xf32>
    %93 = arith.addf %86, %92 : vector<25x32xf32>
    %c1_59 = arith.constant 1 : index
    %c1_60 = arith.constant 1 : index
    %c0_61 = arith.constant 0 : index
    %c0_62 = arith.constant 0 : index
    %94 = vector.load %arg7[%c1_59, %c1_60, %c0_61, %c0_62] : memref<3x3x16x32xf32, #tpu.memory_space<vmem>>, vector<1x1x16x32xf32>
    %95 = vector.shape_cast %94 : vector<1x1x16x32xf32> to vector<16x32xf32>
    %cst_63 = arith.constant dense<0.000000e+00> : vector<25x32xf32>
    %96 = tpu.matmul %43, %95, %cst_63 {dimension_numbers = #tpu.dot_dimension_numbers<[1], [0], [0], [1], [0, 0, 1, 1], [], []>} : vector<25x16xf32>, vector<16x32xf32>, vector<25x32xf32> -> vector<25x32xf32>
    %97 = arith.addf %93, %96 : vector<25x32xf32>
    %c1_64 = arith.constant 1 : index
    %c2_65 = arith.constant 2 : index
    %c0_66 = arith.constant 0 : index
    %c0_67 = arith.constant 0 : index
    %98 = vector.load %arg7[%c1_64, %c2_65, %c0_66, %c0_67] : memref<3x3x16x32xf32, #tpu.memory_space<vmem>>, vector<1x1x16x32xf32>
    %99 = vector.shape_cast %98 : vector<1x1x16x32xf32> to vector<16x32xf32>
    %cst_68 = arith.constant dense<0.000000e+00> : vector<25x32xf32>
    %100 = tpu.matmul %50, %99, %cst_68 {dimension_numbers = #tpu.dot_dimension_numbers<[1], [0], [0], [1], [0, 0, 1, 1], [], []>} : vector<25x16xf32>, vector<16x32xf32>, vector<25x32xf32> -> vector<25x32xf32>
    %101 = arith.addf %97, %100 : vector<25x32xf32>
    %c2_69 = arith.constant 2 : index
    %c0_70 = arith.constant 0 : index
    %c0_71 = arith.constant 0 : index
    %c0_72 = arith.constant 0 : index
    %102 = vector.load %arg7[%c2_69, %c0_70, %c0_71, %c0_72] : memref<3x3x16x32xf32, #tpu.memory_space<vmem>>, vector<1x1x16x32xf32>
    %103 = vector.shape_cast %102 : vector<1x1x16x32xf32> to vector<16x32xf32>
    %cst_73 = arith.constant dense<0.000000e+00> : vector<25x32xf32>
    %104 = tpu.matmul %64, %103, %cst_73 {dimension_numbers = #tpu.dot_dimension_numbers<[1], [0], [0], [1], [0, 0, 1, 1], [], []>} : vector<25x16xf32>, vector<16x32xf32>, vector<25x32xf32> -> vector<25x32xf32>
    %cst_74 = arith.constant 0.000000e+00 : f32
    %105 = vector.broadcast %cst_74 : f32 to vector<1x32xf32>
    %106 = vector.extract_strided_slice %104 {offsets = [0, 0], sizes = [24, 32], strides = [1, 1]} : vector<25x32xf32> to vector<24x32xf32>
    %107 = tpu.concatenate %105, %106 in 0 : vector<1x32xf32>, vector<24x32xf32> -> vector<25x32xf32>
    %108 = arith.addf %101, %107 : vector<25x32xf32>
    %c2_75 = arith.constant 2 : index
    %c1_76 = arith.constant 1 : index
    %c0_77 = arith.constant 0 : index
    %c0_78 = arith.constant 0 : index
    %109 = vector.load %arg7[%c2_75, %c1_76, %c0_77, %c0_78] : memref<3x3x16x32xf32, #tpu.memory_space<vmem>>, vector<1x1x16x32xf32>
    %110 = vector.shape_cast %109 : vector<1x1x16x32xf32> to vector<16x32xf32>
    %cst_79 = arith.constant dense<0.000000e+00> : vector<25x32xf32>
    %111 = tpu.matmul %57, %110, %cst_79 {dimension_numbers = #tpu.dot_dimension_numbers<[1], [0], [0], [1], [0, 0, 1, 1], [], []>} : vector<25x16xf32>, vector<16x32xf32>, vector<25x32xf32> -> vector<25x32xf32>
    %112 = arith.addf %108, %111 : vector<25x32xf32>
    %c2_80 = arith.constant 2 : index
    %c2_81 = arith.constant 2 : index
    %c0_82 = arith.constant 0 : index
    %c0_83 = arith.constant 0 : index
    %113 = vector.load %arg7[%c2_80, %c2_81, %c0_82, %c0_83] : memref<3x3x16x32xf32, #tpu.memory_space<vmem>>, vector<1x1x16x32xf32>
    %114 = vector.shape_cast %113 : vector<1x1x16x32xf32> to vector<16x32xf32>
    %cst_84 = arith.constant dense<0.000000e+00> : vector<25x32xf32>
    %115 = tpu.matmul %64, %114, %cst_84 {dimension_numbers = #tpu.dot_dimension_numbers<[1], [0], [0], [1], [0, 0, 1, 1], [], []>} : vector<25x16xf32>, vector<16x32xf32>, vector<25x32xf32> -> vector<25x32xf32>
    %116 = arith.addf %112, %115 : vector<25x32xf32>
    %c0_85 = arith.constant 0 : index
    %c0_86 = arith.constant 0 : index
    %117 = vector.load %arg8[%c0_85, %c0_86] : memref<1x32xf32, #tpu.memory_space<vmem>>, vector<1x32xf32>
    %118 = vector.broadcast %117 : vector<1x32xf32> to vector<25x32xf32>
    %119 = arith.addf %116, %118 : vector<25x32xf32>
    %cst_87 = arith.constant 0.000000e+00 : f32
    %120 = vector.broadcast %cst_87 : f32 to vector<25x32xf32>
    %121 = arith.maximumf %119, %120 : vector<25x32xf32>
    %c0_88 = arith.constant 0 : index
    %c0_89 = arith.constant 0 : index
    %122 = vector.load %arg9[%c0_88, %c0_89] : memref<32x32xf32, #tpu.memory_space<vmem>>, vector<32x32xf32>
    %cst_90 = arith.constant dense<0.000000e+00> : vector<25x32xf32>
    %123 = tpu.matmul %121, %122, %cst_90 {dimension_numbers = #tpu.dot_dimension_numbers<[1], [0], [0], [1], [0, 0, 1, 1], [], []>} : vector<25x32xf32>, vector<32x32xf32>, vector<25x32xf32> -> vector<25x32xf32>
    %c0_91 = arith.constant 0 : index
    %c0_92 = arith.constant 0 : index
    %124 = vector.load %arg10[%c0_91, %c0_92] : memref<32x32xf32, #tpu.memory_space<vmem>>, vector<32x32xf32>
    %cst_93 = arith.constant dense<0.000000e+00> : vector<25x32xf32>
    %125 = tpu.matmul %34, %124, %cst_93 {dimension_numbers = #tpu.dot_dimension_numbers<[1], [0], [0], [1], [0, 0, 1, 1], [], []>} : vector<25x32xf32>, vector<32x32xf32>, vector<25x32xf32> -> vector<25x32xf32>
    %126 = arith.addf %123, %125 : vector<25x32xf32>
    %c0_94 = arith.constant 0 : index
    %c0_95 = arith.constant 0 : index
    %127 = vector.load %arg11[%c0_94, %c0_95] : memref<1x32xf32, #tpu.memory_space<vmem>>, vector<1x32xf32>
    %128 = vector.broadcast %127 : vector<1x32xf32> to vector<25x32xf32>
    %129 = arith.addf %126, %128 : vector<25x32xf32>
    %cst_96 = arith.constant 0.000000e+00 : f32
    %130 = vector.broadcast %cst_96 : f32 to vector<25x32xf32>
    %131 = arith.maximumf %129, %130 : vector<25x32xf32>
    %c0_97 = arith.constant 0 : index
    %c0_98 = arith.constant 0 : index
    %c0_99 = arith.constant 0 : index
    %132 = vector.load %arg12[%c0_97, %c0_98, %c0_99] : memref<1x25x32xf32, #tpu.memory_space<vmem>>, vector<1x25x32xf32>
    %133 = vector.shape_cast %132 : vector<1x25x32xf32> to vector<25x32xf32>
    %134 = vector.shape_cast %131 : vector<25x32xf32> to vector<1x25x32xf32>
    tpu.vector_store %arg12[%c0_97, %c0_98, %c0_99], %134 {strides = array<i32>} : memref<1x25x32xf32, #tpu.memory_space<vmem>>, vector<1x25x32xf32>,
    return
  }
  func.func @transform_0(%arg0: i32) -> (i32, i32, i32) {
    %c0_i32 = arith.constant 0 : i32
    %c0_i32_0 = arith.constant 0 : i32
    %c0_i32_1 = arith.constant 0 : i32
    return %arg0, %c0_i32, %c0_i32_0 : i32, i32, i32
  }
  func.func @transform_1(%arg0: i32) -> (i32, i32) {
    %c0_i32 = arith.constant 0 : i32
    %c0_i32_0 = arith.constant 0 : i32
    %c0_i32_1 = arith.constant 0 : i32
    return %c0_i32, %c0_i32_0 : i32, i32
  }
  func.func @transform_2(%arg0: i32) -> (i32, i32, i32) {
    %c0_i32 = arith.constant 0 : i32
    %c0_i32_0 = arith.constant 0 : i32
    %c0_i32_1 = arith.constant 0 : i32
    %c0_i32_2 = arith.constant 0 : i32
    return %c0_i32, %c0_i32_0, %c0_i32_1 : i32, i32, i32
  }
  func.func @transform_3(%arg0: i32) -> (i32, i32) {
    %c0_i32 = arith.constant 0 : i32
    %c0_i32_0 = arith.constant 0 : i32
    %c0_i32_1 = arith.constant 0 : i32
    return %c0_i32, %c0_i32_0 : i32, i32
  }
  func.func @transform_4(%arg0: i32) -> (i32, i32) {
    %c0_i32 = arith.constant 0 : i32
    %c0_i32_0 = arith.constant 0 : i32
    %c0_i32_1 = arith.constant 0 : i32
    return %c0_i32, %c0_i32_0 : i32, i32
  }
  func.func @transform_5(%arg0: i32) -> (i32, i32) {
    %c0_i32 = arith.constant 0 : i32
    %c0_i32_0 = arith.constant 0 : i32
    %c0_i32_1 = arith.constant 0 : i32
    return %c0_i32, %c0_i32_0 : i32, i32
  }
  func.func @transform_6(%arg0: i32) -> (i32, i32, i32, i32) {
    %c0_i32 = arith.constant 0 : i32
    %c0_i32_0 = arith.constant 0 : i32
    %c0_i32_1 = arith.constant 0 : i32
    %c0_i32_2 = arith.constant 0 : i32
    %c0_i32_3 = arith.constant 0 : i32
    return %c0_i32, %c0_i32_0, %c0_i32_1, %c0_i32_2 : i32, i32, i32, i32
  }
  func.func @transform_7(%arg0: i32) -> (i32, i32) {
    %c0_i32 = arith.constant 0 : i32
    %c0_i32_0 = arith.constant 0 : i32
    %c0_i32_1 = arith.constant 0 : i32
    return %c0_i32, %c0_i32_0 : i32, i32
  }
  func.func @transform_8(%arg0: i32) -> (i32, i32) {
    %c0_i32 = arith.constant 0 : i32
    %c0_i32_0 = arith.constant 0 : i32
    %c0_i32_1 = arith.constant 0 : i32
    return %c0_i32, %c0_i32_0 : i32, i32
  }
  func.func @transform_9(%arg0: i32) -> (i32, i32) {
    %c0_i32 = arith.constant 0 : i32
    %c0_i32_0 = arith.constant 0 : i32
    %c0_i32_1 = arith.constant 0 : i32
    return %c0_i32, %c0_i32_0 : i32, i32
  }
  func.func @transform_10(%arg0: i32) -> (i32, i32) {
    %c0_i32 = arith.constant 0 : i32
    %c0_i32_0 = arith.constant 0 : i32
    %c0_i32_1 = arith.constant 0 : i32
    return %c0_i32, %c0_i32_0 : i32, i32
  }
  func.func @transform_11(%arg0: i32) -> (i32, i32, i32) {
    %c0_i32 = arith.constant 0 : i32
    %c0_i32_0 = arith.constant 0 : i32
    %c0_i32_1 = arith.constant 0 : i32
    return %arg0, %c0_i32, %c0_i32_0 : i32, i32, i32
  }
}

</mosaic_0001>

<bundles_post_ra>
// kernel: stem_block_forward.1
= control target key start
LH: loop header
LB: loop body
LE: loop exit
PB: predicated region body
PF: predicated region fallthrough
CT: control target
= control target key end

     0   :  { %s1719_s17 = smov 0   ;;  %s2345_s0 = inlined_call_operand.vmem [shape: f32[2,25,108], index: 0, kind: input, shape index: {}]   ;;  %s2346_s1 = inlined_call_operand.vmem [shape: f32[25,1], index: 1, kind: input, shape index: {}]   ;;  %s2347_s2 = inlined_call_operand.vmem [shape: f32[4,108,32], index: 2, kind: input, shape index: {}]   ;;  %s2348_s3 = inlined_call_operand.vmem [shape: f32[1,32], index: 3, kind: input, shape index: {}]   ;;  %s2349_s4 = inlined_call_operand.vmem [shape: f32[32,16], index: 4, kind: input, shape index: {}]   ;;  %s2350_s5 = inlined_call_operand.vmem [shape: f32[1,16], index: 5, kind: input, shape index: {}]   ;;  %s2351_s6 = inlined_call_operand.vmem [shape: f32[3,3,16,32], index: 6, kind: input, shape index: {}]   ;;  %s2352_s7 = inlined_call_operand.vmem [shape: f32[1,32], index: 7, kind: input, shape index: {}]   ;;  %s2353_s8 = inlined_call_operand.vmem [shape: f32[32,32], index: 8, kind: input, shape index: {}]   ;;  %s2354_s9 = inlined_call_operand.vmem [shape: f32[32,32], index: 9, kind: input, shape index: {}]   ;;  %s2355_s10 = inlined_call_operand.vmem [shape: f32[1,32], index: 10, kind: input, shape index: {}]   ;;  %s2356_s11 = inlined_call_operand.vmem [shape: f32[2,25,32], index: 11, kind: output, shape index: {}]  }
   0x1 LB: > { %s1462_s18 = sadd.s32 4294967295, %s1656_s17   ;;  %p1466_p0 = scmp.ge.s32.totalorder %s1656_s17, 1  ;;  %s1656_s17 = sphi %s1719_s17, %s21_s17  }
   0x2   : > { %p337_p1 = scmp.lt.s32.totalorder %s1656_s17, 3 }
   0x4   : > { %p338_p2 = pnand %p1466_p0, %p337_p1 }
   0x5   : > { %p1824_p3 = scmp.lt.s32.totalorder (!%p338_p2), %s1462_s18, 1 }
   0x6   : > { %341 = sbr.rel (%p338_p2) target bundleno = 699 (0x2bb), region = 64 }
   0xb   : > { %v409_v0 = vld [vmem:[%s2347_s2 + $0x68] sm:$0xf]  ;;  %vm426_vm0 = vcmask 1043456   ;;  %v408_v2 = vld [vmem:[%s2347_s2 + $0x60] sm:$0xff]  ;;  %v1527_v3 = vld [vmem:[%s2347_s2 + $0x1b8] sm:$0xf] }
   0xc   : > { %v1508_v1 = vld [vmem:[%s2347_s2 + $0x148] sm:$0xf]  ;;  %1471 = vmatpush.msk.msra.mxu0 %vm426_vm0, %v409_v0  ;;  %v1507_v4 = vld [vmem:[%s2347_s2 + $0x140] sm:$0xff]  ;;  %v1526_v5 = vld [vmem:[%s2347_s2 + $0x1b0] sm:$0xff]  ;;  %1528 = vmatpush.msk.msra.mxu3 %vm426_vm0, %v1527_v3  ;;  %s2359_s18 = smov (!%p1824_p3, %s1462_s18), 1  ;;  %vm413_vm1 = vcmask 883712  }
   0xd   : > { %1509 = vmatpush.msk.msra.mxu2 %vm426_vm0, %v1508_v1  ;;  %v407_v6 = vld [vmem:[%s2347_s2 + $0x58] sm:$0xff]  ;;  %v1525_v8 = vld [vmem:[%s2347_s2 + $0x1a8] sm:$0xff]  ;;  %v406_v9 = vld [vmem:[%s2347_s2 + $0x50] sm:$0xff]  ;;  %s1611_s22 = sshll.u32 %s2359_s18, 5  ;;  %v1658_v0 = vmov 0   ;;  %vm636_vm2 = vcmask 261120  }
   0xe   : > { %v1506_v7 = vld [vmem:[%s2347_s2 + $0x138] sm:$0xff]  ;;  %433 = vmatpush.msra.mxu0 %v408_v2  ;;  %586 = vmatpush.msra.mxu3 %v1526_v5  ;;  %v1505_v10 = vld [vmem:[%s2347_s2 + $0x130] sm:$0xff]  ;;  %v1524_v12 = vld [vmem:[%s2347_s2 + $0x1a0] sm:$0xff]  ;;  %s1922_s15 = scalar_lea.vmem %s2345_s0, %s1611_s22  ;;  %vm855_vm3 = vcmask 130048   ;;  %vm960_vm4 = vcmask 1044480   ;;  %vm899_vm5 = vcmask 1045504   ;;  %s386_s14 = scalar_lea.vmem %s2356_s11, %s1611_s22 }
   0xf   : > { %535 = vmatpush.msra.mxu2 %v1507_v4  ;;  %v1766_v11 = vld [vmem:[%s2347_s2 + $0xd8] sm:$0xf]  ;;  %v1774_v13 = vld [vmem:[%s2347_s2 + $0xd0] sm:$0xff]  ;;  %v405_v14 = vld [vmem:[%s2347_s2 + $0x48] sm:$0xff]  ;;  %1644 = vset.pattern.permute.xlu0 %v1658_v0  ;;  %vm1069_vm6 = vcmask 1040384   ;;  %vm1405_vm7 = vcmask 253952  }
  0x10   : > { %434 = vmatpush.msra.mxu0 %v407_v6  ;;  %587 = vmatpush.msra.mxu3 %v1525_v8  ;;  %v1504_v15 = vld [vmem:[%s2347_s2 + $0x128] sm:$0xff]  ;;  %v1523_v16 = vld [vmem:[%s2347_s2 + $0x198] sm:$0xff]  ;;  %v404_v18 = vld [vmem:[%s2347_s2 + $0x40] sm:$0xff] }
  0x11   : > { %536 = vmatpush.msra.mxu2 %v1506_v7  ;;  %1613 = vmatpush.msk.msra.mxu1 %vm426_vm0, %v1766_v11  ;;  %v1790_v17 = vld [vmem:[%s2347_s2 + $0xc8] sm:$0xff]  ;;  %v1503_v19 = vld [vmem:[%s2347_s2 + $0x120] sm:$0xff]  ;;  %v1522_v20 = vld [vmem:[%s2347_s2 + $0x190] sm:$0xff] }
  0x12   : > { %435 = vmatpush.msra.mxu0 %v406_v9  ;;  %588 = vmatpush.msra.mxu3 %v1524_v12  ;;  %v1805_v21 = vld [vmem:[%s2347_s2 + $0xc0] sm:$0xff]  ;;  %v403_v22 = vld [vmem:[%s2347_s2 + $0x38] sm:$0xff]  ;;  %v1521_v24 = vld [vmem:[%s2347_s2 + $0x188] sm:$0xff] }
  0x13   : > { %537 = vmatpush.msra.mxu2 %v1505_v10  ;;  %1614 = vmatpush.msra.mxu1 %v1774_v13  ;;  %v1502_v23 = vld [vmem:[%s2347_s2 + $0x118] sm:$0xff]  ;;  %v402_v26 = vld [vmem:[%s2347_s2 + $0x30] sm:$0xff]  ;;  %v1520_v28 = vld [vmem:[%s2347_s2 + $0x180] sm:$0xff] }
  0x14   : > { %436 = vmatpush.msra.mxu0 %v405_v14  ;;  %589 = vmatpush.msra.mxu3 %v1523_v16  ;;  %v1820_v25 = vld [vmem:[%s2347_s2 + $0xb8] sm:$0xff]  ;;  %v1501_v27 = vld [vmem:[%s2347_s2 + $0x110] sm:$0xff]  ;;  %v401_v30 = vld [vmem:[%s2347_s2 + $0x28] sm:$0xff] }
  0x15   : > { %538 = vmatpush.msra.mxu2 %v1504_v15  ;;  %1615 = vmatpush.msra.mxu1 %v1790_v17  ;;  %v1841_v29 = vld [vmem:[%s2347_s2 + $0xb0] sm:$0xff]  ;;  %v1500_v31 = vld [vmem:[%s2347_s2 + $0x108] sm:$0xff]  ;;  %v1519_v32 = vld [vmem:[%s2347_s2 + $0x178] sm:$0xff] }
  0x16   : > { %437 = vmatpush.msra.mxu0 %v404_v18  ;;  %590 = vmatpush.msra.mxu3 %v1522_v20  ;;  %v1856_v33 = vld [vmem:[%s2347_s2 + $0xa8] sm:$0xff]  ;;  %v400_v34 = vld [vmem:[%s2347_s2 + $0x20] sm:$0xff]  ;;  %v1518_v36 = vld [vmem:[%s2347_s2 + $0x170] sm:$0xff] }
  0x17   : > { %539 = vmatpush.msra.mxu2 %v1503_v19  ;;  %1616 = vmatpush.msra.mxu1 %v1805_v21  ;;  %v1499_v35 = vld [vmem:[%s2347_s2 + $0x100] sm:$0xff]  ;;  %v399_v38 = vld [vmem:[%s2347_s2 + $0x18] sm:$0xff]  ;;  %v1517_v40 = vld [vmem:[%s2347_s2 + $0x168] sm:$0xff] }
  0x18   : > { %438 = vmatpush.msra.mxu0 %v403_v22  ;;  %591 = vmatpush.msra.mxu3 %v1521_v24  ;;  %v1877_v37 = vld [vmem:[%s2347_s2 + $0xa0] sm:$0xff]  ;;  %v1498_v39 = vld [vmem:[%s2347_s2 + $0xf8] sm:$0xff]  ;;  %v398_v41 = vld [vmem:[%s2347_s2 + $0x10] sm:$0xff] }
  0x19   : > { %540 = vmatpush.msra.mxu2 %v1502_v23  ;;  %1617 = vmatpush.msra.mxu1 %v1820_v25  ;;  %v1895_v42 = vld [vmem:[%s2347_s2 + $0x98] sm:$0xff]  ;;  %v1497_v43 = vld [vmem:[%s2347_s2 + $0xf0] sm:$0xff]  ;;  %v1516_v44 = vld [vmem:[%s2347_s2 + $0x160] sm:$0xff] }
  0x1a   : > { %439 = vmatpush.msra.mxu0 %v402_v26  ;;  %592 = vmatpush.msra.mxu3 %v1520_v28  ;;  %v1908_v45 = vld [vmem:[%s2347_s2 + $0x90] sm:$0xff]  ;;  %v397_v46 = vld [vmem:[%s2347_s2 + $0x8] sm:$0xff]  ;;  %v1515_v48 = vld [vmem:[%s2347_s2 + $0x158] sm:$0xff] }
  0x1b   : > { %541 = vmatpush.msra.mxu2 %v1501_v27  ;;  %1618 = vmatpush.msra.mxu1 %v1841_v29  ;;  %v1496_v47 = vld [vmem:[%s2347_s2 + $0xe8] sm:$0xff]  ;;  %v396_v50 = vld [vmem:[%s2347_s2] sm:$0xff]  ;;  %v1514_v52 = vld [vmem:[%s2347_s2 + $0x150] sm:$0xff] }
  0x1c   : > { %440 = vmatpush.msra.mxu0 %v401_v30  ;;  %593 = vmatpush.msra.mxu3 %v1519_v32  ;;  %v1479_v49 = vld [vmem:[%s2347_s2 + $0x88] sm:$0xff]  ;;  %v1495_v51 = vld [vmem:[%s2347_s2 + $0xe0] sm:$0xff]  ;;  %v1477_v55 = vld [vmem:[%s2347_s2 + $0x78] sm:$0xff] }
  0x1d   : > { %542 = vmatpush.msra.mxu2 %v1500_v31  ;;  %1619 = vmatpush.msra.mxu1 %v1856_v33  ;;  %v387_v53 = vld [vmem:[%s1922_s15] sm:$0xff]  ;;  %v631_v56 = vld [vmem:[%s2349_s4 + $0x18] sm:$0xff]  ;;  %v1476_v57 = vld [vmem:[%s2347_s2 + $0x70] sm:$0xff] }
  0x1e   : > { %441 = vmatpush.msra.mxu0 %v400_v34  ;;  %594 = vmatpush.msra.mxu3 %v1518_v36  ;;  %v1478_v54 = vld [vmem:[%s2347_s2 + $0x80] sm:$0xff]  ;;  %v388_v58 = vld [vmem:[%s1922_s15 + $0x8] sm:$0xff]  ;;  %v630_v59 = vld [vmem:[%s2349_s4 + $0x10] sm:$0xff] }
  0x1f   : > { %543 = vmatpush.msra.mxu2 %v1499_v35  ;;  %1620 = vmatpush.msra.mxu1 %v1877_v37  ;;  %v629_v60 = vld [vmem:[%s2349_s4 + $0x8] sm:$0xff]  ;;  %v389_v61 = vld [vmem:[%s1922_s15 + $0x10] sm:$0xff]  ;;  %v390_v62 = vld [vmem:[%s1922_s15 + $0x18] sm:$0x1] }
  0x20   : > { %442 = vmatpush.msra.mxu0 %v399_v38  ;;  %595 = vmatpush.msra.mxu3 %v1517_v40  ;;  %v628_v63 = vld [vmem:[%s2349_s4] sm:$0xff]  ;;  %v392_v6 = vld [vmem:[%s2346_s1 + $0x8] sm:$0xff]  ;;  %v394_v22 = vld [vmem:[%s2346_s1 + $0x18] sm:$0x1] }
  0x21   : > { %544 = vmatpush.msra.mxu2 %v1498_v39  ;;  %1621 = vmatpush.msra.mxu1 %v1895_v42  ;;  %v391_v1 = vld [vmem:[%s2346_s1] sm:$0xff] }
  0x22   : > { %443 = vmatpush.msra.mxu0 %v398_v41  ;;  %596 = vmatpush.msra.mxu3 %v1516_v44  ;;  %v1998_v2 = vld [vmem:[%s2348_s3] ss:$0 sm:$0xff] }
  0x23   : > { %545 = vmatpush.msra.mxu2 %v1497_v43  ;;  %1622 = vmatpush.msra.mxu1 %v1908_v45 }
  0x24   : > { %444 = vmatpush.msra.mxu0 %v397_v46  ;;  %597 = vmatpush.msra.mxu3 %v1515_v48 }
  0x25   : > { %546 = vmatpush.msra.mxu2 %v1496_v47  ;;  %1623 = vmatpush.msra.mxu1 %v1479_v49 }
  0x26   : > { %445 = vmatpush.msra.mxu0 %v396_v50  ;;  %598 = vmatpush.msra.mxu3 %v1514_v52 }
  0x27   : > { %547 = vmatpush.msra.mxu2 %v1495_v51  ;;  %1472 = vmatmul.msk.f32.vlgmr.msra.gmra.mxu0 %vm413_vm1, %v387_v53 }
  0x28   : > { %1510 = vmatmul.msk.f32.vlgmr.msra.gmra.mxu2 %vm413_vm1, %v387_v53  ;;  %1529 = vmatmul.msk.f32.vlgmr.msra.gmra.mxu3 %vm413_vm1, %v387_v53 }
  0x29   : > { %1624 = vmatpush.msra.mxu1 %v1478_v54  ;;  %1490 = vmatpush.msk.msrb.mxu0 %vm426_vm0, %v1766_v11 }
  0x2a   : > { %1627 = vmatpush.msrb.mxu3 %v631_v56  ;;  %1631 = vmatpush.msrb.mxu2 %v631_v56 }
  0x2b   : > { %1625 = vmatpush.msra.mxu1 %v1477_v55  ;;  %484 = vmatpush.msrb.mxu0 %v1774_v13  ;;  %v393_v13 = vld [vmem:[%s2346_s1 + $0x10] sm:$0xff] }
  0x2c   : > { %1628 = vmatpush.msrb.mxu3 %v630_v59  ;;  %1632 = vmatpush.msrb.mxu2 %v630_v59 }
  0x2d   : > { %1626 = vmatpush.msra.mxu1 %v1476_v57  ;;  %485 = vmatpush.msrb.mxu0 %v1790_v17 }
  0x2e   : > { %1492 = vmatmul.msk.f32.vlgmr.msra.gmra.mxu1 %vm413_vm1, %v388_v58  ;;  %1629 = vmatpush.msrb.mxu3 %v629_v60 }
  0x2f   : > { %1473 = vmatmul.msk.f32.gmra.mxu0 %vm413_vm1, %v388_v58  ;;  %1633 = vmatpush.msrb.mxu2 %v629_v60 }
  0x30   : > { %1511 = vmatmul.msk.f32.gmra.mxu2 %vm413_vm1, %v388_v58  ;;  %1530 = vmatmul.msk.f32.gmra.mxu3 %vm413_vm1, %v388_v58 }
  0x31   : > { %486 = vmatpush.msrb.mxu0 %v1805_v21  ;;  %730 = vmatpush.msrb.mxu1 %v631_v56 }
  0x32   : > { %1630 = vmatpush.msrb.mxu3 %v628_v63  ;;  %1634 = vmatpush.msrb.mxu2 %v628_v63 }
  0x33   : > { %487 = vmatpush.msrb.mxu0 %v1820_v25  ;;  %731 = vmatpush.msrb.mxu1 %v630_v59 }
  0x34   : > { %828 = vmatpush.msra.mxu3 %v631_v56  ;;  %1645 = vset.pattern.permute.xlu1 %v1658_v0 }
  0x35   : > { %488 = vmatpush.msrb.mxu0 %v1841_v29  ;;  %732 = vmatpush.msrb.mxu1 %v629_v60 }
  0x36   : > { %1493 = vmatmul.msk.f32.gmra.mxu1 %vm413_vm1, %v389_v61  ;;  %829 = vmatpush.msra.mxu3 %v630_v59 }
  0x37   : > { %1474 = vmatmul.msk.f32.gmra.mxu0 %vm413_vm1, %v389_v61  ;;  %733 = vmatpush.msrb.mxu1 %v628_v63 }
  0x38   : > { %1512 = vmatmul.msk.f32.gmra.mxu2 %vm413_vm1, %v389_v61  ;;  %1531 = vmatmul.msk.f32.gmra.mxu3 %vm413_vm1, %v389_v61 }
  0x39   : > { %489 = vmatpush.msrb.mxu0 %v1856_v33  ;;  %830 = vmatpush.msra.mxu3 %v629_v60 }
  0x3a   : > { %684 = vperm.xlu0 %1644, %v391_v1   ;;  %694 = vperm.xlu1 %1645, %v393_v13   ;;  %v1560_v13 = vld [vmem:[%s2351_s6 + $0x28] sm:$0xff] }
  0x3b   : > { %490 = vmatpush.msrb.mxu0 %v1877_v37  ;;  %831 = vmatpush.msra.mxu3 %v628_v63 }
  0x3c   : > { %992 = vmatpush.msra.mxu2 %v1560_v13 }
  0x3d   : > { %491 = vmatpush.msrb.mxu0 %v1895_v42 }
  0x3e   : > { %1494 = vmatmul.msk.f32.gmra.mxu1 %vm413_vm1, %v390_v62 }
  0x3f   : > { %492 = vmatpush.msrb.mxu0 %v1908_v45 }
  0x40   : > { %1475 = vmatmul.msk.f32.gmra.mxu0 %vm413_vm1, %v390_v62  ;;  %1513 = vmatmul.msk.f32.gmra.mxu2 %vm413_vm1, %v390_v62 }
  0x41   : > { %1532 = vmatmul.msk.f32.gmra.mxu3 %vm413_vm1, %v390_v62  ;;  %493 = vmatpush.msrb.mxu0 %v1479_v49 }
  0x42   : > { %689 = vperm.xlu0 %1644, %v392_v6   ;;  %699 = vperm.xlu1 %1645, %v394_v22  }
  0x43   : > { %494 = vmatpush.msrb.mxu0 %v1478_v54 }
  0x45   : > { %495 = vmatpush.msrb.mxu0 %v1477_v55 }
  0x47   : > { %496 = vmatpush.msrb.mxu0 %v1476_v57 }
  0x48   : > { %1491 = vmatmul.msk.f32.vlgmr.msrb.gmra.mxu0 %vm413_vm1, %v387_v53 }
  0x49   : > { %661 = vmatpush.msra.mxu0 %v631_v56 }
  0x4b   : > { %662 = vmatpush.msra.mxu0 %v630_v59 }
  0x4d   : > { %663 = vmatpush.msra.mxu0 %v629_v60 }
  0x4f   : > { %664 = vmatpush.msra.mxu0 %v628_v63 }
  0x51   : > { %779 = vmatpush.msrb.mxu0 %v631_v56 }
  0x53   : > { %780 = vmatpush.msrb.mxu0 %v630_v59 }
  0x55   : > { %781 = vmatpush.msrb.mxu0 %v629_v60 }
  0x57   : > { %782 = vmatpush.msrb.mxu0 %v628_v63 }
  0xa4   : > { %v447_v3 = vpop.f32.mrf.mxu0 }
  0xa5   : > { %v2001_v4 = vadd.f32 %v1998_v2, %v447_v3  ;;  %v1553_v3 = vld [vmem:[%s2351_s6 + $0x10] sm:$0xff] }
  0xa7   : > { %v459_v5 = vmax.f32 %v2001_v4, 0.0  ;;  %v2087_v4 = vld [vmem:[%s2350_s5] ss:$0 sm:$0xff] }
  0xa9   : > { %1533 = vmatmul.msk.f32.vlgmr.msra.gmra.mxu0 %vm636_vm2, %v459_v5 }
  0xab   : > { %v549_v7 = vpop.f32.mrf.mxu2  ;;  %v600_v8 = vpop.f32.mrf.mxu3 }
  0xac   : > { %v550_v9 = vadd.f32 %v1998_v2, %v549_v7  ;;  %v2012_v10 = vadd.f32 %v1998_v2, %v600_v8  ;;  %v450_v11 = vpop.f32.mrf.mxu0  ;;  %v501_v12 = vpop.f32.mrf.mxu1  ;;  %v1566_v7 = vld [vmem:[%s2351_s6 + $0x38] sm:$0xff]  ;;  %v1565_v8 = vld [vmem:[%s2351_s6 + $0x30] sm:$0xff] }
  0xad   : > { %v451_v14 = vadd.f32 %v1998_v2, %v450_v11  ;;  %v2019_v15 = vadd.f32 %v1998_v2, %v501_v12  ;;  %v854_v11 = vld [vmem:[%s2351_s6 + $0x8] sm:$0xff] }
  0xae   : > { %v561_v16 = vmax.f32 %v550_v9, 0.0  ;;  %v612_v17 = vmax.f32 %v2012_v10, 0.0  ;;  %882 = vmatpush.msra.mxu0 %v854_v11  ;;  %v1306_v11 = vld [vmem:[%s2354_s9 + $0x10] sm:$0xff] }
  0xaf   : > { %v460_v18 = vmax.f32 %v451_v14, 0.0  ;;  %v511_v19 = vmax.f32 %v2019_v15, 0.0  ;;  %v2105_v14 = vpop.permute.xlu0 %684 }
  0xb0   : > { %v2023_v20 = vmax.f32 %v561_v16, %v612_v17 }
  0xb1   : > { %v2025_v21 = vmax.f32 %v460_v18, %v511_v19  ;;  %1534 = vmatmul.msk.f32.vlgmr.msrb.gmra.mxu3 %vm636_vm2, %v460_v18  ;;  %1541 = vmatmul.msk.f32.vlgmr.msrb.gmra.mxu0 %vm636_vm2, %v561_v16  ;;  %v853_v16 = vld [vmem:[%s2351_s6] sm:$0xff] }
  0xb2   : > { %1052 = vmatpush.msrb.mxu3 %v1566_v7  ;;  %883 = vmatpush.msra.mxu0 %v853_v16  ;;  %v1583_v7 = vld [vmem:[%s2351_s6 + $0x60] sm:$0xff]  ;;  %v1305_v16 = vld [vmem:[%s2354_s9 + $0x8] sm:$0xff] }
  0xb3   : > { %v552_v23 = vpop.f32.mrf.mxu2  ;;  %v603_v24 = vpop.f32.mrf.mxu3 }
  0xb4   : > { %v553_v25 = vadd.f32 %v1998_v2, %v552_v23  ;;  %v604_v26 = vadd.f32 %v1998_v2, %v603_v24  ;;  %v453_v27 = vpop.f32.mrf.mxu0  ;;  %v504_v28 = vpop.f32.mrf.mxu1  ;;  %1053 = vmatpush.msrb.mxu3 %v1565_v8  ;;  %v1578_v23 = vld [vmem:[%s2351_s6 + $0x58] sm:$0xff]  ;;  %v1577_v24 = vld [vmem:[%s2351_s6 + $0x50] sm:$0xff] }
  0xb5   : > { %v454_v29 = vadd.f32 %v1998_v2, %v453_v27  ;;  %v505_v30 = vadd.f32 %v1998_v2, %v504_v28  ;;  %v1307_v8 = vld [vmem:[%s2354_s9 + $0x18] sm:$0xff] }
  0xb6   : > { %v562_v31 = vmax.f32 %v553_v25, 0.0  ;;  %v613_v32 = vmax.f32 %v604_v26, 0.0 }
  0xb7   : > { %v461_v33 = vmax.f32 %v454_v29, 0.0  ;;  %v512_v34 = vmax.f32 %v505_v30, 0.0  ;;  %v2134_v30 = vpop.permute.xlu0 %689 }
  0xb8   : > { %v2036_v35 = vmax.f32 %v562_v31, %v613_v32  ;;  %1542 = vmatmul.msk.f32.vlgmr.msrb.gmra.mxu2 %vm636_vm2, %v562_v31 }
  0xb9   : > { %v2039_v36 = vmax.f32 %v461_v33, %v512_v34  ;;  %1535 = vmatmul.msk.f32.gmra.mxu3 %vm636_vm2, %v461_v33 }
  0xba   : > { %v625_v37 = vmax.f32 %v2025_v21, %v2036_v35 }
  0xbb   : > { %v555_v38 = vpop.f32.mrf.mxu2  ;;  %v606_v39 = vpop.f32.mrf.mxu3 }
  0xbc   : > { %v556_v40 = vadd.f32 %v1998_v2, %v555_v38  ;;  %v607_v41 = vadd.f32 %v1998_v2, %v606_v39  ;;  %v507_v42 = vpop.f32.mrf.mxu1  ;;  %v2145_v38 = vpop.permute.xlu1 %694 }
  0xbd   : > { %v456_v43 = vpop.f32.mrf.mxu0  ;;  %v508_v44 = vadd.f32 %v1998_v2, %v507_v42 }
  0xbe   : > { %v563_v45 = vmax.f32 %v556_v40, 0.0  ;;  %v614_v46 = vmax.f32 %v607_v41, 0.0  ;;  %v457_v47 = vadd.f32 %v1998_v2, %v456_v43 }
  0xbf   : > { %v513_v48 = vmax.f32 %v508_v44, 0.0 }
  0xc0   : > { %v2048_v49 = vmax.f32 %v563_v45, %v614_v46  ;;  %v462_v50 = vmax.f32 %v457_v47, 0.0  ;;  %1543 = vmatmul.msk.f32.gmra.mxu2 %vm636_vm2, %v563_v45  ;;  %v1590_v47 = vld [vmem:[%s2351_s6 + $0x78] sm:$0xff] }
  0xc2   : > { %v2051_v51 = vmax.f32 %v462_v50, %v513_v48  ;;  %1536 = vmatmul.msk.f32.gmra.mxu3 %vm636_vm2, %v462_v50  ;;  %v626_v52 = vmax.f32 %v2039_v36, %v2048_v49 }
  0xc3   : > { %v558_v53 = vpop.f32.mrf.mxu2 }
  0xc4   : > { %v559_v54 = vadd.f32 %v1998_v2, %v558_v53  ;;  %v609_v55 = vpop.f32.mrf.mxu3 }
  0xc5   : > { %v610_v56 = vadd.f32 %v1998_v2, %v609_v55  ;;  %v498_v57 = vpop.f32.mrf.mxu0 }
  0xc6   : > { %v564_v58 = vmax.f32 %v559_v54, 0.0  ;;  %v499_v59 = vadd.f32 %v1998_v2, %v498_v57  ;;  %v1554_v2 = vld [vmem:[%s2351_s6 + $0x18] sm:$0xff]  ;;  %v1589_v54 = vld [vmem:[%s2351_s6 + $0x70] sm:$0xff] }
  0xc7   : > { %v615_v60 = vmax.f32 %v610_v56, 0.0  ;;  %943 = vmatpush.msra.mxu1 %v1554_v2 }
  0xc8   : > { %v510_v61 = vmax.f32 %v499_v59, 0.0  ;;  %1544 = vmatmul.msk.f32.gmra.mxu2 %vm636_vm2, %v564_v58 }
  0xc9   : > { %v2060_v62 = vmax.f32 %v564_v58, %v615_v60  ;;  %944 = vmatpush.msra.mxu1 %v1553_v3  ;;  %v2169_v58 = vpop.permute.xlu1 %699 }
  0xca   : > { %v2064_v63 = vmax.f32 %v459_v5, %v510_v61  ;;  %1537 = vmatmul.msk.f32.vlgmr.msrb.gmra.mxu1 %vm636_vm2, %v510_v61  ;;  %1545 = vmatmul.msk.f32.vlgmr.msra.gmra.mxu3 %vm636_vm2, %v612_v17  ;;  %v1559_v17 = vld [vmem:[%s2351_s6 + $0x20] sm:$0xff] }
  0xcb   : > { %v627_v0 = vmax.f32 %v2051_v51, %v2060_v62  ;;  %993 = vmatpush.msra.mxu2 %v1559_v17  ;;  %1149 = vmatpush.msrb.mxu1 %v1578_v23  ;;  %v1304_v17 = vld [vmem:[%s2354_s9] sm:$0xff] }
  0xcc   : > { %v624_v1 = vmax.f32 %v2064_v63, %v2023_v20  ;;  %1233 = vmatpush.msra.mxu3 %v1590_v47 }
  0xcd   : > { %1150 = vmatpush.msrb.mxu1 %v1577_v24 }
  0xce   : > { %1234 = vmatpush.msra.mxu3 %v1589_v54 }
  0xd2   : > { %1538 = vmatmul.msk.f32.gmra.mxu1 %vm636_vm2, %v511_v19  ;;  %1546 = vmatmul.msk.f32.gmra.mxu3 %vm636_vm2, %v613_v32  ;;  %v1572_v19 = vld [vmem:[%s2351_s6 + $0x48] sm:$0xff] }
  0xd3   : > { %1113 = vmatpush.msrb.mxu0 %v1572_v19 }
  0xda   : > { %1539 = vmatmul.msk.f32.gmra.mxu1 %vm636_vm2, %v512_v34  ;;  %1547 = vmatmul.msk.f32.gmra.mxu3 %vm636_vm2, %v614_v46  ;;  %v1571_v34 = vld [vmem:[%s2351_s6 + $0x40] sm:$0xff]  ;;  %v1584_v46 = vld [vmem:[%s2351_s6 + $0x68] sm:$0xff] }
  0xdb   : > { %1114 = vmatpush.msrb.mxu0 %v1571_v34  ;;  %1185 = vmatpush.msrb.mxu2 %v1584_v46 }
  0xdd   : > { %1186 = vmatpush.msrb.mxu2 %v1583_v7 }
  0xe2   : > { %1540 = vmatmul.msk.f32.gmra.mxu1 %vm636_vm2, %v513_v48  ;;  %1548 = vmatmul.msk.f32.gmra.mxu3 %vm636_vm2, %v615_v60 }
 0x126   : > { %v666_v5 = vpop.f32.mrf.mxu0 }
 0x127   : > { %v2090_v6 = vadd.f32 %v2087_v4, %v666_v5 }
 0x12e   : > { %v784_v9 = vpop.f32.mrf.mxu0 }
 0x12f   : > { %v785_v10 = vadd.f32 %v2087_v4, %v784_v9 }
 0x131   : > { %v796_v12 = vmax.f32 %v785_v10, 0.0  ;;  %v1596_v10 = vld [vmem:[%s2351_s6 + $0x88] sm:$0xff] }
 0x133   : > { %v2108_v15 = vmul.f32 %v796_v12, %v2105_v14 }
 0x134   : > { %v669_v18 = vpop.f32.mrf.mxu3 }
 0x135   : > { %v2120_v22 = vadd.f32 %v2087_v4, %v669_v18  ;;  %1555 = vmatmul.msk.f32.vlgmr.msra.gmra.mxu1 %vm855_vm3, %v2108_v15 }
 0x136   : > { %1332 = vmatpush.msra.mxu1 %v1307_v8 }
 0x138   : > { %1333 = vmatpush.msra.mxu1 %v1306_v11 }
 0x13a   : > { %1334 = vmatpush.msra.mxu1 %v1305_v16 }
 0x13b   : > { %v787_v25 = vpop.f32.mrf.mxu2 }
 0x13c   : > { %v788_v26 = vadd.f32 %v2087_v4, %v787_v25  ;;  %v672_v27 = vpop.f32.mrf.mxu3  ;;  %1335 = vmatpush.msra.mxu1 %v1304_v17 }
 0x13d   : > { %v2132_v28 = vadd.f32 %v2087_v4, %v672_v27 }
 0x13e   : > { %v797_v29 = vmax.f32 %v788_v26, 0.0 }
 0x140   : > { %v2137_v31 = vmul.f32 %v797_v29, %v2134_v30 }
 0x142   : > { %1556 = vmatmul.msk.f32.gmra.mxu1 %vm855_vm3, %v2137_v31 }
 0x143   : > { %v790_v32 = vpop.f32.mrf.mxu2 }
 0x144   : > { %v791_v33 = vadd.f32 %v2087_v4, %v790_v32 }
 0x145   : > { %v675_v39 = vpop.f32.mrf.mxu3 }
 0x146   : > { %v798_v40 = vmax.f32 %v791_v33, 0.0  ;;  %v2148_v41 = vadd.f32 %v2087_v4, %v675_v39 }
 0x147   : > { %v735_v42 = vpop.f32.mrf.mxu1 }
 0x148   : > { %v2151_v43 = vmul.f32 %v798_v40, %v2145_v38  ;;  %v736_v44 = vadd.f32 %v2087_v4, %v735_v42  ;;  %v681_v20 = vmax.f32 %v2148_v41, 0.0 }
 0x14a   : > { %v747_v45 = vmax.f32 %v736_v44, 0.0  ;;  %1557 = vmatmul.msk.f32.gmra.mxu1 %vm855_vm3, %v2151_v43  ;;  %v1595_v44 = vld [vmem:[%s2351_s6 + $0x80] sm:$0xff]  ;;  %v705_v63 = vmul.f32 %v2169_v58, %v681_v20 }
 0x14b   : > { %v793_v48 = vpop.f32.mrf.mxu2 }
 0x14c   : > { %v751_v50 = vmul.f32 %v747_v45, %v2105_v14  ;;  %v794_v53 = vadd.f32 %v2087_v4, %v793_v48 }
 0x14d   : > { %v833_v55 = vpop.f32.mrf.mxu3 }
 0x14e   : > { %v799_v56 = vmax.f32 %v794_v53, 0.0  ;;  %v834_v57 = vadd.f32 %v2087_v4, %v833_v55  ;;  %1567 = vmatmul.msk.f32.vlgmr.msrb.gmra.mxu3 %vm855_vm3, %v751_v50  ;;  %v1302_v55 = vld [vmem:[%s2353_s8 + $0x10] sm:$0xff] }
 0x14f   : > { %v738_v59 = vpop.f32.mrf.mxu1 }
 0x150   : > { %v2172_v60 = vmul.f32 %v799_v56, %v2169_v58  ;;  %v845_v61 = vmax.f32 %v834_v57, 0.0  ;;  %v739_v2 = vadd.f32 %v2087_v4, %v738_v59  ;;  %v1301_v59 = vld [vmem:[%s2353_s8 + $0x8] sm:$0xff] }
 0x152   : > { %v2176_v3 = vmul.f32 %v845_v61, %v2105_v14  ;;  %v748_v5 = vmax.f32 %v739_v2, 0.0  ;;  %1558 = vmatmul.msk.f32.gmra.mxu1 %vm855_vm3, %v2172_v60  ;;  %v1300_v61 = vld [vmem:[%s2353_s8] sm:$0xff] }
 0x154   : > { %v752_v9 = vmul.f32 %v748_v5, %v2134_v30  ;;  %1549 = vmatmul.msk.f32.vlgmr.msra.gmra.mxu0 %vm855_vm3, %v2176_v3  ;;  %1561 = vmatmul.msk.f32.vlgmr.msra.gmra.mxu2 %vm855_vm3, %v2176_v3 }
 0x155   : > { %v836_v12 = vpop.f32.mrf.mxu3  ;;  %1269 = vmatpush.msra.mxu0 %v1596_v10 }
 0x156   : > { %v837_v13 = vadd.f32 %v2087_v4, %v836_v12  ;;  %1568 = vmatmul.msk.f32.gmra.mxu3 %vm855_vm3, %v752_v9 }
 0x157   : > { %v741_v18 = vpop.f32.mrf.mxu1  ;;  %1270 = vmatpush.msra.mxu0 %v1595_v44 }
 0x158   : > { %v846_v19 = vmax.f32 %v837_v13, 0.0  ;;  %v742_v23 = vadd.f32 %v2087_v4, %v741_v18 }
 0x15a   : > { %v850_v24 = vmul.f32 %v846_v19, %v2134_v30  ;;  %v749_v25 = vmax.f32 %v742_v23, 0.0  ;;  %1579 = vmatmul.msk.f32.vlgmr.msrb.gmra.mxu1 %vm855_vm3, %v751_v50  ;;  %v678_v50 = vmax.f32 %v2090_v6, 0.0  ;;  %v680_v6 = vmax.f32 %v2132_v28, 0.0 }
 0x15c   : > { %v753_v26 = vmul.f32 %v749_v25, %v2145_v38  ;;  %1550 = vmatmul.msk.f32.gmra.mxu0 %vm855_vm3, %v850_v24  ;;  %1562 = vmatmul.msk.f32.gmra.mxu2 %vm855_vm3, %v850_v24  ;;  %v702_v53 = vmul.f32 %v2105_v14, %v678_v50  ;;  %v704_v14 = vmul.f32 %v2145_v38, %v680_v6 }
 0x15d   : > { %v839_v27 = vpop.f32.mrf.mxu3 }
 0x15e   : > { %v840_v29 = vadd.f32 %v2087_v4, %v839_v27  ;;  %1569 = vmatmul.msk.f32.gmra.mxu3 %vm855_vm3, %v753_v26 }
 0x15f   : > { %v744_v32 = vpop.f32.mrf.mxu1 }
 0x160   : > { %v847_v33 = vmax.f32 %v840_v29, 0.0  ;;  %v745_v34 = vadd.f32 %v2087_v4, %v744_v32 }
 0x162   : > { %v851_v39 = vmul.f32 %v847_v33, %v2145_v38  ;;  %v750_v40 = vmax.f32 %v745_v34, 0.0  ;;  %1580 = vmatmul.msk.f32.gmra.mxu1 %vm855_vm3, %v752_v9 }
 0x164   : > { %v754_v42 = vmul.f32 %v750_v40, %v2169_v58  ;;  %1551 = vmatmul.msk.f32.gmra.mxu0 %vm855_vm3, %v851_v39  ;;  %1563 = vmatmul.msk.f32.gmra.mxu2 %vm855_vm3, %v851_v39 }
 0x165   : > { %v842_v45 = vpop.f32.mrf.mxu3 }
 0x166   : > { %v843_v46 = vadd.f32 %v2087_v4, %v842_v45  ;;  %1570 = vmatmul.msk.f32.gmra.mxu3 %vm855_vm3, %v754_v42  ;;  %v679_v4 = vmax.f32 %v2120_v22, 0.0 }
 0x168   : > { %v848_v47 = vmax.f32 %v843_v46, 0.0  ;;  %v703_v54 = vmul.f32 %v2134_v30, %v679_v4 }
 0x16a   : > { %v852_v48 = vmul.f32 %v848_v47, %v2169_v58  ;;  %1581 = vmatmul.msk.f32.gmra.mxu1 %vm855_vm3, %v753_v26 }
 0x16c   : > { %1552 = vmatmul.msk.f32.gmra.mxu0 %vm855_vm3, %v852_v48  ;;  %1564 = vmatmul.msk.f32.gmra.mxu2 %vm855_vm3, %v852_v48 }
 0x16e   : > { %1591 = vmatmul.msk.f32.vlgmr.msra.gmra.mxu3 %vm855_vm3, %v2108_v15 }
 0x172   : > { %1582 = vmatmul.msk.f32.gmra.mxu1 %vm855_vm3, %v754_v42 }
 0x174   : > { %1573 = vmatmul.msk.f32.vlgmr.msrb.gmra.mxu0 %vm855_vm3, %v702_v53  ;;  %1585 = vmatmul.msk.f32.vlgmr.msrb.gmra.mxu2 %vm855_vm3, %v2176_v3 }
 0x176   : > { %1592 = vmatmul.msk.f32.gmra.mxu3 %vm855_vm3, %v2137_v31  ;;  %v1303_v31 = vld [vmem:[%s2353_s8 + $0x18] sm:$0xff] }
 0x177   : > { %1373 = vmatpush.msra.mxu2 %v1303_v31 }
 0x179   : > { %1374 = vmatpush.msra.mxu2 %v1302_v55 }
 0x17a   : > { %1601 = vmatmul.msk.f32.vlgmr.msra.gmra.mxu1 %vm636_vm2, %v624_v1 }
 0x17b   : > { %1375 = vmatpush.msra.mxu2 %v1301_v59 }
 0x17c   : > { %1574 = vmatmul.msk.f32.gmra.mxu0 %vm855_vm3, %v703_v54  ;;  %1586 = vmatmul.msk.f32.gmra.mxu2 %vm855_vm3, %v850_v24 }
 0x17d   : > { %1376 = vmatpush.msra.mxu2 %v1300_v61 }
 0x17e   : > { %1593 = vmatmul.msk.f32.gmra.mxu3 %vm855_vm3, %v2151_v43 }
 0x182   : > { %1602 = vmatmul.msk.f32.gmra.mxu1 %vm636_vm2, %v625_v37 }
 0x184   : > { %1575 = vmatmul.msk.f32.gmra.mxu0 %vm855_vm3, %v704_v14  ;;  %1587 = vmatmul.msk.f32.gmra.mxu2 %vm855_vm3, %v851_v39 }
 0x186   : > { %1594 = vmatmul.msk.f32.gmra.mxu3 %vm855_vm3, %v2172_v60 }
 0x18a   : > { %1603 = vmatmul.msk.f32.gmra.mxu1 %vm636_vm2, %v626_v52 }
 0x18c   : > { %1576 = vmatmul.msk.f32.gmra.mxu0 %vm855_vm3, %v705_v63  ;;  %1588 = vmatmul.msk.f32.gmra.mxu2 %vm855_vm3, %v852_v48 }
 0x192   : > { %1604 = vmatmul.msk.f32.gmra.mxu1 %vm636_vm2, %v627_v0 }
 0x194   : > { %1597 = vmatmul.msk.f32.vlgmr.msra.gmra.mxu0 %vm855_vm3, %v2176_v3 }
 0x19c   : > { %1598 = vmatmul.msk.f32.gmra.mxu0 %vm855_vm3, %v850_v24 }
 0x1a4   : > { %1599 = vmatmul.msk.f32.gmra.mxu0 %vm855_vm3, %v851_v39 }
 0x1ac   : > { %1600 = vmatmul.msk.f32.gmra.mxu0 %vm855_vm3, %v852_v48 }
 0x1b2   : > { %v946_v21 = vpop.f32.mrf.mxu1 }
 0x1b3   : > { %v961_v35 = vrot.slane %v946_v21, 3 }
 0x1b5   : > { %v970_v9 = vsel %vm960_vm4, 0.0, %v961_v35 }
 0x1bf   : > { %v949_v36 = vpop.f32.mrf.mxu1 }
 0x1c0   : > { %v962_v37 = vrot.slane %v949_v36, 3 }
 0x1c2   : > { %v963_v49 = vsel %vm960_vm4, %v961_v35, %v962_v37 }
 0x1c7   : > { %v2276_v52 = vpop.f32.mrf.mxu1 }
 0x1c8   : > { %v964_v51 = vrot.slane %v2276_v52, 3 }
 0x1ca   : > { %v2282_v62 = vsel %vm960_vm4, %v962_v37, %v964_v51 }
 0x1cf   : > { %v955_v0 = vpop.f32.mrf.mxu1 }
 0x1d1   : > { %v885_v1 = vpop.f32.mrf.mxu0  ;;  %v1055_v15 = vpop.f32.mrf.mxu3 }
 0x1d2   : > { %v900_v3 = vrot.slane %v885_v1, 2  ;;  %v1070_v13 = vrot.slane %v1055_v15, 7  ;;  %v1648_v1 = vld [vmem:[%s2352_s7] ss:$0 sm:$0xff] }
 0x1d4   : > { %v909_v10 = vsel %vm899_vm5, 0.0, %v900_v3  ;;  %v1079_v25 = vsel %vm1069_vm6, 0.0, %v1070_v13 }
 0x1d5   : > { %v971_v12 = vadd.f32 %v970_v9, %v909_v10 }
 0x1d7   : > { %v995_v22 = vpop.f32.mrf.mxu2  ;;  %v1152_v19 = vpop.f32.mrf.mxu1 }
 0x1d8   : > { %v1009_v7 = vrot.slane %v995_v22, 3 }
 0x1d9   : > { %v888_v28 = vpop.f32.mrf.mxu0  ;;  %v2284_v30 = vpop.f32.mrf.mxu3 }
 0x1da   : > { %v1018_v11 = vsel %vm960_vm4, 0.0, %v1009_v7  ;;  %v901_v16 = vrot.slane %v888_v28, 2  ;;  %v1071_v39 = vrot.slane %v2284_v30, 7 }
 0x1db   : > { %v1019_v18 = vadd.f32 %v1018_v11, %v971_v12 }
 0x1dc   : > { %v902_v26 = vsel %vm899_vm5, %v900_v3, %v901_v16  ;;  %v1072_v54 = vsel %vm1069_vm6, %v1070_v13, %v1071_v39 }
 0x1dd   : > { %v1080_v27 = vadd.f32 %v1079_v25, %v1019_v18  ;;  %v972_v33 = vadd.f32 %v963_v49, %v902_v26 }
 0x1df   : > { %v998_v38 = vpop.f32.mrf.mxu2  ;;  %v1155_v53 = vpop.f32.mrf.mxu1 }
 0x1e0   : > { %v1010_v23 = vrot.slane %v998_v38, 3 }
 0x1e1   : > { %v2289_v41 = vpop.f32.mrf.mxu0  ;;  %v2291_v43 = vpop.f32.mrf.mxu3 }
 0x1e2   : > { %v1011_v29 = vsel %vm960_vm4, %v1009_v7, %v1010_v23  ;;  %v903_v40 = vrot.slane %v2289_v41, 2  ;;  %v1073_v36 = vrot.slane %v2291_v43, 7 }
 0x1e3   : > { %v1020_v44 = vadd.f32 %v1011_v29, %v972_v33 }
 0x1e4   : > { %v904_v4 = vsel %vm899_vm5, %v901_v16, %v903_v40  ;;  %v1074_v38 = vsel %vm1069_vm6, %v1071_v39, %v1073_v36  ;;  %v1649_v39 = vld [vmem:[%s2355_s10] ss:$0 sm:$0xff] }
 0x1e5   : > { %v1081_v14 = vadd.f32 %v1072_v54, %v1020_v44  ;;  %v973_v21 = vadd.f32 %v2282_v62, %v904_v4  ;;  %v974_v62 = vadd.f32 %v964_v51, %v903_v40 }
 0x1e7   : > { %v2296_v56 = vpop.f32.mrf.mxu2 }
 0x1e8   : > { %v1012_v45 = vrot.slane %v2296_v56, 3  ;;  %v1158_v56 = vpop.f32.mrf.mxu1 }
 0x1e9   : > { %v894_v57 = vpop.f32.mrf.mxu0  ;;  %v1064_v58 = vpop.f32.mrf.mxu3 }
 0x1ea   : > { %v1013_v20 = vsel %vm960_vm4, %v1010_v23, %v1012_v45  ;;  %v1022_v58 = vadd.f32 %v1012_v45, %v974_v62 }
 0x1eb   : > { %v1021_v49 = vadd.f32 %v1013_v20, %v973_v21 }
 0x1ec   : > { %v1083_v7 = vadd.f32 %v1073_v36, %v1022_v58 }
 0x1ed   : > { %v1082_v41 = vadd.f32 %v1074_v38, %v1021_v49 }
 0x1ef   : > { %v1004_v60 = vpop.f32.mrf.mxu2 }
 0x1f0   : > { %v1161_v12 = vpop.f32.mrf.mxu1 }
 0x1f1   : > { %v1116_v2 = vpop.f32.mrf.mxu0  ;;  %v1236_v46 = vpop.f32.mrf.mxu3 }
 0x1f2   : > { %v1128_v34 = vadd.f32 %v1116_v2, %v1080_v27 }
 0x1f4   : > { %v1164_v50 = vadd.f32 %v1152_v19, %v1128_v34 }
 0x1f7   : > { %v1188_v5 = vpop.f32.mrf.mxu2 }
 0x1f8   : > { %v1202_v32 = vrot.slane %v1188_v5, 7  ;;  %v1337_v34 = vpop.f32.mrf.mxu1 }
 0x1f9   : > { %v1119_v8 = vpop.f32.mrf.mxu0  ;;  %v1239_v31 = vpop.f32.mrf.mxu3 }
 0x1fa   : > { %v1211_v47 = vsel %vm1069_vm6, 0.0, %v1202_v32  ;;  %v1129_v35 = vadd.f32 %v1119_v8, %v1081_v14 }
 0x1fb   : > { %v1212_v6 = vadd.f32 %v1211_v47, %v1164_v50 }
 0x1fc   : > { %v1165_v28 = vadd.f32 %v1155_v53, %v1129_v35 }
 0x1fd   : > { %v1248_v0 = vadd.f32 %v1236_v46, %v1212_v6 }
 0x1ff   : > { %v1191_v17 = vpop.f32.mrf.mxu2 }
 0x200   : > { %v1203_v63 = vrot.slane %v1191_v17, 7  ;;  %v1340_v45 = vpop.f32.mrf.mxu1 }
 0x201   : > { %v1122_v24 = vpop.f32.mrf.mxu0  ;;  %v1242_v10 = vpop.f32.mrf.mxu3 }
 0x202   : > { %v1204_v15 = vsel %vm1069_vm6, %v1202_v32, %v1203_v63  ;;  %v1130_v59 = vadd.f32 %v1122_v24, %v1082_v41 }
 0x203   : > { %v1213_v55 = vadd.f32 %v1204_v15, %v1165_v28 }
 0x204   : > { %v1166_v5 = vadd.f32 %v1158_v56, %v1130_v59 }
 0x205   : > { %v1249_v61 = vadd.f32 %v1239_v31, %v1213_v55 }
 0x207   : > { %v1194_v42 = vpop.f32.mrf.mxu2 }
 0x208   : > { %v1205_v57 = vrot.slane %v1194_v42, 7  ;;  %v1343_v4 = vpop.f32.mrf.mxu1 }
 0x209   : > { %v1125_v48 = vpop.f32.mrf.mxu0  ;;  %v1245_v25 = vpop.f32.mrf.mxu3 }
 0x20a   : > { %v1206_v2 = vsel %vm1069_vm6, %v1203_v63, %v1205_v57  ;;  %v1131_v9 = vadd.f32 %v1125_v48, %v1083_v7 }
 0x20b   : > { %v1214_v51 = vadd.f32 %v1206_v2, %v1166_v5 }
 0x20c   : > { %v1167_v13 = vadd.f32 %v1161_v12, %v1131_v9 }
 0x20d   : > { %v1250_v16 = vadd.f32 %v1242_v10, %v1214_v51 }
 0x20e   : > { %v1215_v19 = vadd.f32 %v1205_v57, %v1167_v13 }
 0x20f   : > { %v1197_v37 = vpop.f32.mrf.mxu2 }
 0x210   : > { %v1251_v26 = vadd.f32 %v1245_v25, %v1215_v19  ;;  %v1346_v63 = vpop.f32.mrf.mxu1 }
 0x211   : > { %v1272_v22 = vpop.f32.mrf.mxu0 }
 0x212   : > { %v1284_v30 = vadd.f32 %v1272_v22, %v1248_v0 }
 0x214   : > { %v1292_v43 = vadd.f32 %v1648_v1, %v1284_v30 }
 0x216   : > { %v1296_v60 = vmax.f32 %v1292_v43, 0.0 }
 0x218   : > { %1605 = vmatmul.msk.f32.vlgmr.msra.gmra.mxu2 %vm636_vm2, %v1296_v60 }
 0x219   : > { %v1275_v3 = vpop.f32.mrf.mxu0 }
 0x21a   : > { %v1285_v8 = vadd.f32 %v1275_v3, %v1249_v61 }
 0x21c   : > { %v1293_v52 = vadd.f32 %v1648_v1, %v1285_v8 }
 0x21e   : > { %v1297_v11 = vmax.f32 %v1293_v52, 0.0 }
 0x220   : > { %1606 = vmatmul.msk.f32.gmra.mxu2 %vm636_vm2, %v1297_v11 }
 0x221   : > { %v1278_v17 = vpop.f32.mrf.mxu0 }
 0x222   : > { %v1286_v18 = vadd.f32 %v1278_v17, %v1250_v16 }
 0x224   : > { %v1294_v23 = vadd.f32 %v1648_v1, %v1286_v18 }
 0x226   : > { %v1298_v24 = vmax.f32 %v1294_v23, 0.0 }
 0x228   : > { %1607 = vmatmul.msk.f32.gmra.mxu2 %vm636_vm2, %v1298_v24 }
 0x229   : > { %v1281_v27 = vpop.f32.mrf.mxu0 }
 0x22a   : > { %v1287_v29 = vadd.f32 %v1281_v27, %v1251_v26 }
 0x22c   : > { %v1295_v32 = vadd.f32 %v1648_v1, %v1287_v29 }
 0x22e   : > { %v1299_v33 = vmax.f32 %v1295_v32, 0.0 }
 0x230   : > { %1608 = vmatmul.msk.f32.gmra.mxu2 %vm636_vm2, %v1299_v33 }
 0x29b   : > { %v1378_v40 = vpop.f32.mrf.mxu2 }
 0x29c   : > { %v1379_v42 = vadd.f32 %v1378_v40, %v1337_v34 }
 0x29e   : > { %v1394_v44 = vadd.f32 %v1649_v39, %v1379_v42 }
 0x2a0   : > { %v1398_v46 = vmax.f32 %v1394_v44, 0.0 }
 0x2a2   : > { %1402 = vst.msk [vmem:[%s386_s14] sm:$0xff] %vm636_vm2, %v1398_v46 }
 0x2a3   : > { %v1381_v47 = vpop.f32.mrf.mxu2 }
 0x2a4   : > { %v1382_v48 = vadd.f32 %v1381_v47, %v1340_v45 }
 0x2a6   : > { %v1395_v50 = vadd.f32 %v1649_v39, %v1382_v48 }
 0x2a8   : > { %v1399_v53 = vmax.f32 %v1395_v50, 0.0 }
 0x2aa   : > { %1403 = vst.msk [vmem:[%s386_s14 + $0x8] sm:$0xff] %vm636_vm2, %v1399_v53 }
 0x2ab   : > { %v1384_v54 = vpop.f32.mrf.mxu2 }
 0x2ac   : > { %v1385_v6 = vadd.f32 %v1384_v54, %v1343_v4 }
 0x2ae   : > { %v1396_v14 = vadd.f32 %v1649_v39, %v1385_v6 }
 0x2b0   : > { %v1400_v20 = vmax.f32 %v1396_v14, 0.0 }
 0x2b2   : > { %1404 = vst.msk [vmem:[%s386_s14 + $0x10] sm:$0xff] %vm636_vm2, %v1400_v20 }
 0x2b3   : > { %v1387_v21 = vpop.f32.mrf.mxu2 }
 0x2b4   : > { %v1388_v35 = vadd.f32 %v1387_v21, %v1346_v63 }
 0x2b6   : > { %v1397_v36 = vadd.f32 %v1649_v39, %v1388_v35 }
 0x2b8   : > { %v1401_v37 = vmax.f32 %v1397_v36, 0.0 }
 0x2ba   : > { %1406 = vst.msk [vmem:[%s386_s14 + $0x18] sm:$0x1] %vm1405_vm7, %v1401_v37 }
 0x2bb PF: > { %s21_s17 = sadd.s32 1, %s1656_s17  }
 0x2bc   : > { %p18_p4 = scmp.ge.s32.totalorder %s21_s17, 4  }
 0x2be   :  { %20 = sbr.rel (!%p18_p4) target bundleno = 1 (0x1), region = 105 }

</bundles_post_ra>
